<compile_context>
chip_gen: v7x
topology: tpu7x:2x2x1
jax: 0.10.0
libtpu: 0.0.40
codegen_flags: <defaults>
</compile_context>

<pallas_src>
import jax
import jax.numpy as jnp
from jax.experimental import pallas as pl
from jax.experimental.pallas import tpu as pltpu


# ----------------------------------------------------------------------------- kernel
def decoder_attn_kernel(
    x_ref, h_ref, enc_ref,                       # activations (per batch tile)
    w_attn_ref, vba_ref,                         # attention params
    w_gi_ref, w_gh_ref, b_g_ref,                 # GRU params (fused input weight)
    w_fc_ref, bf_ref,                            # fc params (fused weight)
    out_ref,                                     # packed [Bt, P] output slab
):
    x = x_ref[...]          # [Bt, Din]
    h = h_ref[...]          # [Bt, H]
    enc = enc_ref[...]      # [Bt, S, E2]
    Bt, S, E2 = enc.shape
    Din = x.shape[-1]
    H = h.shape[-1]

    # ---- Bahdanau attention: energy = tanh([h; enc] @ Wa^T + ba)
    wa_h = w_attn_ref[0:H, :]            # [H,  H]   (hidden part of the cat)
    wa_e = w_attn_ref[H:, :]             # [E2, H]   (encoder part of the cat)
    ba = vba_ref[0:1, :]                 # [1, H]
    v = vba_ref[1:2, :]                  # [1, H]

    e_h = jnp.dot(h, wa_h, preferred_element_type=jnp.float32)                      # [Bt, H]
    e_e = jnp.dot(enc.reshape(Bt * S, E2), wa_e,
                  preferred_element_type=jnp.float32).reshape(Bt, S, H)              # [Bt,S,H]
    energy = jnp.tanh(e_e + e_h[:, None, :] + ba[None, :, :])                        # [Bt,S,H]

    # ---- scores on the MXU (flash-style batched contraction): [Bt,1,H]x[Bt,S,H]->[Bt,1,S]
    v_b = jnp.broadcast_to(v[None, :, :], (Bt, 1, H))
    scores = jnp.einsum('bqh,bsh->bqs', v_b, energy,
                        preferred_element_type=jnp.float32)                          # [Bt,1,S]

    # ---- numerically stable softmax; 1/sum folded into the context scale (EUP recip)
    m = jnp.max(scores, axis=-1, keepdims=True)                                      # [Bt,1,1]
    p = jnp.exp(scores - m)                                                          # [Bt,1,S]
    denom = jnp.sum(p, axis=-1, keepdims=True)                                       # [Bt,1,1]

    # ---- weighted context on the MXU: [Bt,1,S] x [Bt,S,E2] -> [Bt,1,E2]
    ctx = jnp.einsum('bqs,bse->bqe', p, enc, preferred_element_type=jnp.float32)
    weighted = (ctx * pl.reciprocal(denom, approx=True))[:, 0, :]                    # [Bt,E2]

    # ---- fused single-step GRU (PyTorch gate order r, z, n)
    rnn_in = jnp.concatenate([x, weighted], axis=-1)                                 # [Bt, Din+E2]
    gi = jnp.dot(rnn_in, w_gi_ref[...], preferred_element_type=jnp.float32) + b_g_ref[0:1, :]
    gh = jnp.dot(h, w_gh_ref[...], preferred_element_type=jnp.float32) + b_g_ref[1:2, :]
    r = jax.nn.sigmoid(gi[:, 0:H] + gh[:, 0:H])
    z = jax.nn.sigmoid(gi[:, H:2 * H] + gh[:, H:2 * H])
    n = jnp.tanh(gi[:, 2 * H:3 * H] + r * gh[:, 2 * H:3 * H])
    h_new = (1.0 - z) * n + z * h                                                    # [Bt, H]

    # ---- fused fc: pred = cat(h_new, weighted, x) @ Wfc^T + bfc
    fc_in = jnp.concatenate([h_new, weighted, x], axis=-1)                           # [Bt, H+E2+Din]
    pred = (jnp.dot(fc_in, w_fc_ref[...], preferred_element_type=jnp.float32)
            + bf_ref[...])                                                           # [Bt, Din]

    # ---- lane-dense packed output: one full-width unmasked store
    P = out_ref.shape[-1]
    parts = [pred, h_new]
    if P > Din + H:
        parts.append(jnp.zeros((Bt, P - Din - H), jnp.float32))
    out_ref[...] = jnp.concatenate(parts, axis=-1)


# ----------------------------------------------------------------------------- param prep (hoisted)
def prepare_params(params):
    """Transpose/pack torch-shaped weights ONCE (outside the per-step decode call)."""
    H = params["w_hh"].shape[1]
    Din = params["fc_W"].shape[0]
    return {
        "w_attn": params["attn_W"].T,                                   # [(H+E2), H]
        "vba": jnp.stack([params["attn_b"], params["v_W"][0]], axis=0),  # [2, H]  (ba row, v row)
        "w_gi": params["w_ih"].T,                                       # [(Din+E2), 3H]
        "w_gh": params["w_hh"].T,                                       # [H, 3H]
        "b_g": jnp.stack([params["b_ih"], params["b_hh"]], axis=0),      # [2, 3H]
        "w_fc": params["fc_W"].T,                                       # [(H+E2+Din), Din]
        "bf": params["fc_b"].reshape(1, Din),                           # [1, Din]
    }
    # NOTE: on v6e/v7x these slabs (and encoder_outputs) can additionally be cast to
    # bfloat16 for the MXU (keep f32 accumulation) to halve DMA bytes.


# ----------------------------------------------------------------------------- wrapper
def decoder_attn_step(prep, x, hidden, encoder_outputs, *, batch_tile=8):
    B, Din = x.shape
    H = hidden.shape[-1]
    _, S, E2 = encoder_outputs.shape
    Bt = min(batch_tile, B)
    assert B % Bt == 0, "batch must be divisible by the batch tile"
    P = pl.cdiv(Din + H, 128) * 128
    grid = (B // Bt,)

    weights = [prep["w_attn"], prep["vba"], prep["w_gi"], prep["w_gh"],
               prep["b_g"], prep["w_fc"], prep["bf"]]

    def w_spec(a):
        n = a.ndim
        return pl.BlockSpec(a.shape, lambda i, _n=n: (0,) * _n)   # resident across grid steps

    flops = 2 * B * (H * H + S * E2 * H + S * H + S * E2
                     + (Din + E2) * 3 * H + H * 3 * H + (H + E2 + Din) * Din)
    transcendentals = B * (S * H + S + 3 * H + 1)
    bytes_accessed = 4 * (x.size + hidden.size + encoder_outputs.size
                          + sum(int(w.size) for w in weights) + B * P)

    out = pl.pallas_call(
        decoder_attn_kernel,
        grid=grid,
        in_specs=[
            pl.BlockSpec((Bt, Din), lambda i: (i, 0)),
            pl.BlockSpec((Bt, H), lambda i: (i, 0)),
            pl.BlockSpec((Bt, S, E2), lambda i: (i, 0, 0)),
            *[w_spec(w) for w in weights],
        ],
        out_specs=pl.BlockSpec((Bt, P), lambda i: (i, 0)),
        out_shape=jax.ShapeDtypeStruct((B, P), jnp.float32),
        compiler_params=pltpu.CompilerParams(dimension_semantics=("parallel",)),
        cost_estimate=pl.CostEstimate(flops=flops, transcendentals=transcendentals,
                                      bytes_accessed=bytes_accessed),
    )(x, hidden, encoder_outputs, *weights)

    return out[:, :Din], out[:, Din:Din + H]


# ----------------------------------------------------------------------------- reference
def decoder_attn_reference(params, x, hidden, enc):
    B, S, E2 = enc.shape
    H = hidden.shape[-1]
    hrep = jnp.broadcast_to(hidden[:, None, :], (B, S, H))
    cat = jnp.concatenate([hrep, enc], axis=-1)
    energy = jnp.tanh(cat @ params["attn_W"].T + params["attn_b"])
    scores = (energy @ params["v_W"].T)[..., 0]
    a = jax.nn.softmax(scores, axis=-1)
    weighted = jnp.einsum("bs,bse->be", a, enc)
    rnn_in = jnp.concatenate([x, weighted], axis=-1)
    gi = rnn_in @ params["w_ih"].T + params["b_ih"]
    gh = hidden @ params["w_hh"].T + params["b_hh"]
    r = jax.nn.sigmoid(gi[:, :H] + gh[:, :H])
    z = jax.nn.sigmoid(gi[:, H:2 * H] + gh[:, H:2 * H])
    n = jnp.tanh(gi[:, 2 * H:] + r * gh[:, 2 * H:])
    h_new = (1.0 - z) * n + z * hidden
    pred = jnp.concatenate([h_new, weighted, x], axis=-1) @ params["fc_W"].T + params["fc_b"]
    return pred, h_new


# ----------------------------------------------------------------------------- params
def make_params(key, input_size, enc_hidden, dec_hidden):
    E2 = 2 * enc_hidden
    H = dec_hidden

    def unif(k, shape, fan_in):
        b = 1.0 / jnp.sqrt(jnp.float32(fan_in))
        return jax.random.uniform(k, shape, jnp.float32, -b, b)

    ks = jax.random.split(key, 10)
    return {
        # attention: Linear(E2 + H -> H), v: Linear(H -> 1, no bias)
        "attn_W": unif(ks[0], (H, H + E2), H + E2),
        "attn_b": unif(ks[1], (H,), H + E2),
        "v_W": unif(ks[2], (1, H), H),
        # GRU(input = input_size + E2, hidden = H), gates stacked [r; z; n]
        "w_ih": unif(ks[3], (3 * H, input_size + E2), H),
        "w_hh": unif(ks[4], (3 * H, H), H),
        "b_ih": unif(ks[5], (3 * H,), H),
        "b_hh": unif(ks[6], (3 * H,), H),
        # fc: Linear(H + E2 + input_size -> input_size)
        "fc_W": unif(ks[7], (input_size, H + E2 + input_size), H + E2 + input_size),
        "fc_b": unif(ks[8], (input_size,), H + E2 + input_size),
    }


# ----------------------------------------------------------------------------- main
if __name__ == "__main__":
    B, INPUT_SIZE, ENC_H, DEC_H, SRC_LEN = 16, 8, 16, 32, 16
    key = jax.random.PRNGKey(0)
    kp, kx, kh, ke = jax.random.split(key, 4)

    params = make_params(kp, INPUT_SIZE, ENC_H, DEC_H)
    x = jax.random.normal(kx, (B, INPUT_SIZE), jnp.float32)
    hidden = jax.random.normal(kh, (B, DEC_H), jnp.float32)
    encoder_outputs = jax.random.normal(ke, (B, SRC_LEN, 2 * ENC_H), jnp.float32)

    prep = prepare_params(params)                 # weight packing hoisted out of the step
    fwd = jax.jit(decoder_attn_step)
    pred, h_new = fwd(prep, x, hidden, encoder_outputs)
    jax.block_until_ready((pred, h_new))

    pred_ref, h_ref = decoder_attn_reference(params, x, hidden, encoder_outputs)
    assert pred.shape == (B, INPUT_SIZE) and h_new.shape == (B, DEC_H)
    assert jnp.allclose(pred, pred_ref, atol=2e-3, rtol=2e-3), "pred mismatch"
    assert jnp.allclose(h_new, h_ref, atol=2e-3, rtol=2e-3), "hidden mismatch"

    print("KERNEL_OK")
</pallas_src>

<mosaic_0001>
module attributes {stable_mosaic.version = 11 : i64} {
  func.func @decoder_attn_kernel(%arg0: i32, %arg1: memref<8x8xf32, #tpu.memory_space<vmem>>, %arg2: memref<8x32xf32, #tpu.memory_space<vmem>>, %arg3: memref<8x16x32xf32, #tpu.memory_space<vmem>>, %arg4: memref<64x32xf32, #tpu.memory_space<vmem>>, %arg5: memref<2x32xf32, #tpu.memory_space<vmem>>, %arg6: memref<40x96xf32, #tpu.memory_space<vmem>>, %arg7: memref<32x96xf32, #tpu.memory_space<vmem>>, %arg8: memref<2x96xf32, #tpu.memory_space<vmem>>, %arg9: memref<72x8xf32, #tpu.memory_space<vmem>>, %arg10: memref<1x8xf32, #tpu.memory_space<vmem>>, %arg11: memref<8x128xf32, #tpu.memory_space<vmem>>) attributes {dimension_semantics = [#tpu.dimension_semantics<parallel>], iteration_bounds = array<i64: 2>, scalar_prefetch = 0 : i64, scratch_operands = 0 : i64, tpu.core_type = #tpu.core_type<tc>, window_params = [{transform_indices = @transform_0, window_bounds = array<i64: 8, 8>}, {transform_indices = @transform_1, window_bounds = array<i64: 8, 32>}, {transform_indices = @transform_2, window_bounds = array<i64: 8, 16, 32>}, {pipeline_mode = #tpu.pipeline_mode<synchronous>, transform_indices = @transform_3, window_bounds = array<i64: 64, 32>}, {pipeline_mode = #tpu.pipeline_mode<synchronous>, transform_indices = @transform_4, window_bounds = array<i64: 2, 32>}, {pipeline_mode = #tpu.pipeline_mode<synchronous>, transform_indices = @transform_5, window_bounds = array<i64: 40, 96>}, {pipeline_mode = #tpu.pipeline_mode<synchronous>, transform_indices = @transform_6, window_bounds = array<i64: 32, 96>}, {pipeline_mode = #tpu.pipeline_mode<synchronous>, transform_indices = @transform_7, window_bounds = array<i64: 2, 96>}, {pipeline_mode = #tpu.pipeline_mode<synchronous>, transform_indices = @transform_8, window_bounds = array<i64: 72, 8>}, {pipeline_mode = #tpu.pipeline_mode<synchronous>, transform_indices = @transform_9, window_bounds = array<i64: 1, 8>}, {transform_indices = @transform_10, window_bounds = array<i64: 8, 128>}]} {
    %c0 = arith.constant 0 : index
    %c0_0 = arith.constant 0 : index
    %0 = vector.load %arg1[%c0, %c0_0] : memref<8x8xf32, #tpu.memory_space<vmem>>, vector<8x8xf32>
    %c0_1 = arith.constant 0 : index
    %c0_2 = arith.constant 0 : index
    %1 = vector.load %arg2[%c0_1, %c0_2] : memref<8x32xf32, #tpu.memory_space<vmem>>, vector<8x32xf32>
    %c0_3 = arith.constant 0 : index
    %c0_4 = arith.constant 0 : index
    %c0_5 = arith.constant 0 : index
    %2 = vector.load %arg3[%c0_3, %c0_4, %c0_5] : memref<8x16x32xf32, #tpu.memory_space<vmem>>, vector<8x16x32xf32>
    %c0_6 = arith.constant 0 : index
    %c0_7 = arith.constant 0 : index
    %3 = vector.load %arg4[%c0_6, %c0_7] : memref<64x32xf32, #tpu.memory_space<vmem>>, vector<32x32xf32>
    %c32 = arith.constant 32 : index
    %c0_8 = arith.constant 0 : index
    %4 = vector.load %arg4[%c32, %c0_8] : memref<64x32xf32, #tpu.memory_space<vmem>>, vector<32x32xf32>
    %c0_9 = arith.constant 0 : index
    %c0_10 = arith.constant 0 : index
    %5 = vector.load %arg5[%c0_9, %c0_10] : memref<2x32xf32, #tpu.memory_space<vmem>>, vector<1x32xf32>
    %c1 = arith.constant 1 : index
    %c0_11 = arith.constant 0 : index
    %6 = vector.load %arg5[%c1, %c0_11] : memref<2x32xf32, #tpu.memory_space<vmem>>, vector<1x32xf32>
    %cst = arith.constant dense<0.000000e+00> : vector<8x32xf32>
    %7 = tpu.matmul %1, %3, %cst {dimension_numbers = #tpu.dot_dimension_numbers<[1], [0], [0], [1], [0, 0, 1, 1], [], []>} : vector<8x32xf32>, vector<32x32xf32>, vector<8x32xf32> -> vector<8x32xf32>
    %8 = vector.shape_cast %2 : vector<8x16x32xf32> to vector<128x32xf32>
    %cst_12 = arith.constant dense<0.000000e+00> : vector<128x32xf32>
    %9 = tpu.matmul %8, %4, %cst_12 {dimension_numbers = #tpu.dot_dimension_numbers<[1], [0], [0], [1], [0, 0, 1, 1], [], []>} : vector<128x32xf32>, vector<32x32xf32>, vector<128x32xf32> -> vector<128x32xf32>
    %10 = vector.shape_cast %9 : vector<128x32xf32> to vector<8x16x32xf32>
    %11 = vector.shape_cast %7 : vector<8x32xf32> to vector<8x1x32xf32>
    %12 = vector.broadcast %11 : vector<8x1x32xf32> to vector<8x16x32xf32>
    %13 = arith.addf %10, %12 : vector<8x16x32xf32>
    %14 = vector.shape_cast %5 : vector<1x32xf32> to vector<1x1x32xf32>
    %15 = vector.broadcast %14 : vector<1x1x32xf32> to vector<8x16x32xf32>
    %16 = arith.addf %13, %15 : vector<8x16x32xf32>
    %17 = math.tanh %16 : vector<8x16x32xf32>
    %18 = vector.shape_cast %6 : vector<1x32xf32> to vector<1x1x32xf32>
    %19 = vector.shape_cast %18 : vector<1x1x32xf32> to vector<1x1x32xf32>
    %20 = vector.broadcast %19 : vector<1x1x32xf32> to vector<8x1x32xf32>
    "tpu.trace_start"() <{level = 10 : i32, message = "bqh,bsh->bqs"}> : () -> ()
    %cst_13 = arith.constant dense<0.000000e+00> : vector<8x1x16xf32>
    %21 = tpu.matmul %20, %17, %cst_13 {dimension_numbers = #tpu.dot_dimension_numbers<[2], [2], [1], [1], [0, 0, 0, 1, 1, 1], [0], [0]>} : vector<8x1x32xf32>, vector<8x16x32xf32>, vector<8x1x16xf32> -> vector<8x1x16xf32>
    "tpu.trace_stop"() : () -> ()
    %cst_14 = arith.constant dense<0xFF800000> : vector<8x1xf32>
    %22 = vector.multi_reduction <maximumf>, %21, %cst_14 [2] : vector<8x1x16xf32> to vector<8x1xf32>
    %23 = vector.shape_cast %22 : vector<8x1xf32> to vector<8x1x1xf32>
    %24 = vector.broadcast %23 : vector<8x1x1xf32> to vector<8x1x16xf32>
    %25 = arith.subf %21, %24 : vector<8x1x16xf32>
    %26 = math.exp %25 : vector<8x1x16xf32>
    %cst_15 = arith.constant dense<0.000000e+00> : vector<8x1xf32>
    %27 = vector.multi_reduction <add>, %26, %cst_15 [2] : vector<8x1x16xf32> to vector<8x1xf32>
    %28 = vector.shape_cast %27 : vector<8x1xf32> to vector<8x1x1xf32>
    "tpu.trace_start"() <{level = 10 : i32, message = "bqs,bse->bqe"}> : () -> ()
    %cst_16 = arith.constant dense<0.000000e+00> : vector<8x1x32xf32>
    %29 = tpu.matmul %26, %2, %cst_16 {dimension_numbers = #tpu.dot_dimension_numbers<[2], [1], [1], [2], [0, 0, 0, 1, 1, 2], [0], [0]>} : vector<8x1x16xf32>, vector<8x16x32xf32>, vector<8x1x32xf32> -> vector<8x1x32xf32>
    "tpu.trace_stop"() : () -> ()
    %30 = tpu.reciprocal %28 {approx = true} : vector<8x1x1xf32> -> vector<8x1x1xf32>
    %31 = vector.broadcast %30 : vector<8x1x1xf32> to vector<8x1x32xf32>
    %32 = arith.mulf %29, %31 : vector<8x1x32xf32>
    %33 = vector.shape_cast %32 : vector<8x1x32xf32> to vector<8x32xf32>
    %34 = tpu.concatenate %0, %33 in 1 : vector<8x8xf32>, vector<8x32xf32> -> vector<8x40xf32>
    %c0_17 = arith.constant 0 : index
    %c0_18 = arith.constant 0 : index
    %35 = vector.load %arg6[%c0_17, %c0_18] : memref<40x96xf32, #tpu.memory_space<vmem>>, vector<40x96xf32>
    %cst_19 = arith.constant dense<0.000000e+00> : vector<8x96xf32>
    %36 = tpu.matmul %34, %35, %cst_19 {dimension_numbers = #tpu.dot_dimension_numbers<[1], [0], [0], [1], [0, 0, 1, 1], [], []>} : vector<8x40xf32>, vector<40x96xf32>, vector<8x96xf32> -> vector<8x96xf32>
    %c0_20 = arith.constant 0 : index
    %c0_21 = arith.constant 0 : index
    %37 = vector.load %arg8[%c0_20, %c0_21] : memref<2x96xf32, #tpu.memory_space<vmem>>, vector<1x96xf32>
    %38 = vector.broadcast %37 : vector<1x96xf32> to vector<8x96xf32>
    %39 = arith.addf %36, %38 : vector<8x96xf32>
    %c0_22 = arith.constant 0 : index
    %c0_23 = arith.constant 0 : index
    %40 = vector.load %arg7[%c0_22, %c0_23] : memref<32x96xf32, #tpu.memory_space<vmem>>, vector<32x96xf32>
    %cst_24 = arith.constant dense<0.000000e+00> : vector<8x96xf32>
    %41 = tpu.matmul %1, %40, %cst_24 {dimension_numbers = #tpu.dot_dimension_numbers<[1], [0], [0], [1], [0, 0, 1, 1], [], []>} : vector<8x32xf32>, vector<32x96xf32>, vector<8x96xf32> -> vector<8x96xf32>
    %c1_25 = arith.constant 1 : index
    %c0_26 = arith.constant 0 : index
    %42 = vector.load %arg8[%c1_25, %c0_26] : memref<2x96xf32, #tpu.memory_space<vmem>>, vector<1x96xf32>
    %43 = vector.broadcast %42 : vector<1x96xf32> to vector<8x96xf32>
    %44 = arith.addf %41, %43 : vector<8x96xf32>
    %45 = vector.extract_strided_slice %39 {offsets = [0, 0], sizes = [8, 32], strides = [1, 1]} : vector<8x96xf32> to vector<8x32xf32>
    %46 = vector.extract_strided_slice %44 {offsets = [0, 0], sizes = [8, 32], strides = [1, 1]} : vector<8x96xf32> to vector<8x32xf32>
    %47 = arith.addf %45, %46 : vector<8x32xf32>
    %48 = arith.negf %47 : vector<8x32xf32>
    %49 = math.exp %48 : vector<8x32xf32>
    %cst_27 = arith.constant 1.000000e+00 : f32
    %50 = vector.broadcast %cst_27 : f32 to vector<8x32xf32>
    %51 = arith.addf %50, %49 : vector<8x32xf32>
    %52 = arith.divf %50, %51 : vector<8x32xf32>
    %53 = vector.extract_strided_slice %39 {offsets = [0, 32], sizes = [8, 32], strides = [1, 1]} : vector<8x96xf32> to vector<8x32xf32>
    %54 = vector.extract_strided_slice %44 {offsets = [0, 32], sizes = [8, 32], strides = [1, 1]} : vector<8x96xf32> to vector<8x32xf32>
    %55 = arith.addf %53, %54 : vector<8x32xf32>
    %56 = arith.negf %55 : vector<8x32xf32>
    %57 = math.exp %56 : vector<8x32xf32>
    %cst_28 = arith.constant 1.000000e+00 : f32
    %58 = vector.broadcast %cst_28 : f32 to vector<8x32xf32>
    %59 = arith.addf %58, %57 : vector<8x32xf32>
    %60 = arith.divf %58, %59 : vector<8x32xf32>
    %61 = vector.extract_strided_slice %39 {offsets = [0, 64], sizes = [8, 32], strides = [1, 1]} : vector<8x96xf32> to vector<8x32xf32>
    %62 = vector.extract_strided_slice %44 {offsets = [0, 64], sizes = [8, 32], strides = [1, 1]} : vector<8x96xf32> to vector<8x32xf32>
    %63 = arith.mulf %52, %62 : vector<8x32xf32>
    %64 = arith.addf %61, %63 : vector<8x32xf32>
    %65 = math.tanh %64 : vector<8x32xf32>
    %cst_29 = arith.constant 1.000000e+00 : f32
    %66 = vector.broadcast %cst_29 : f32 to vector<8x32xf32>
    %67 = arith.subf %66, %60 : vector<8x32xf32>
    %68 = arith.mulf %67, %65 : vector<8x32xf32>
    %69 = arith.mulf %60, %1 : vector<8x32xf32>
    %70 = arith.addf %68, %69 : vector<8x32xf32>
    %71 = tpu.concatenate %70, %33, %0 in 1 : vector<8x32xf32>, vector<8x32xf32>, vector<8x8xf32> -> vector<8x72xf32>
    %c0_30 = arith.constant 0 : index
    %c0_31 = arith.constant 0 : index
    %72 = vector.load %arg9[%c0_30, %c0_31] : memref<72x8xf32, #tpu.memory_space<vmem>>, vector<72x8xf32>
    %cst_32 = arith.constant dense<0.000000e+00> : vector<8x8xf32>
    %73 = tpu.matmul %71, %72, %cst_32 {dimension_numbers = #tpu.dot_dimension_numbers<[1], [0], [0], [1], [0, 0, 1, 1], [], []>} : vector<8x72xf32>, vector<72x8xf32>, vector<8x8xf32> -> vector<8x8xf32>
    %c0_33 = arith.constant 0 : index
    %c0_34 = arith.constant 0 : index
    %74 = vector.load %arg10[%c0_33, %c0_34] : memref<1x8xf32, #tpu.memory_space<vmem>>, vector<1x8xf32>
    %75 = vector.broadcast %74 : vector<1x8xf32> to vector<8x8xf32>
    %76 = arith.addf %73, %75 : vector<8x8xf32>
    %cst_35 = arith.constant 0.000000e+00 : f32
    %77 = vector.broadcast %cst_35 : f32 to vector<8x88xf32>
    %78 = tpu.concatenate %76, %70, %77 in 1 : vector<8x8xf32>, vector<8x32xf32>, vector<8x88xf32> -> vector<8x128xf32>
    %c0_36 = arith.constant 0 : index
    %c0_37 = arith.constant 0 : index
    %79 = vector.load %arg11[%c0_36, %c0_37] : memref<8x128xf32, #tpu.memory_space<vmem>>, vector<8x128xf32>
    tpu.vector_store %arg11[%c0_36, %c0_37], %78 {strides = array<i32>} : memref<8x128xf32, #tpu.memory_space<vmem>>, vector<8x128xf32>,
    return
  }
  func.func @transform_0(%arg0: i32) -> (i32, i32) {
    %c0_i32 = arith.constant 0 : i32
    %c0_i32_0 = arith.constant 0 : i32
    return %arg0, %c0_i32 : i32, i32
  }
  func.func @transform_1(%arg0: i32) -> (i32, i32) {
    %c0_i32 = arith.constant 0 : i32
    %c0_i32_0 = arith.constant 0 : i32
    return %arg0, %c0_i32 : i32, i32
  }
  func.func @transform_2(%arg0: i32) -> (i32, i32, i32) {
    %c0_i32 = arith.constant 0 : i32
    %c0_i32_0 = arith.constant 0 : i32
    %c0_i32_1 = arith.constant 0 : i32
    return %arg0, %c0_i32, %c0_i32_0 : i32, i32, i32
  }
  func.func @transform_3(%arg0: i32) -> (i32, i32) {
    %c0_i32 = arith.constant 0 : i32
    %c0_i32_0 = arith.constant 0 : i32
    %c0_i32_1 = arith.constant 0 : i32
    return %c0_i32, %c0_i32_0 : i32, i32
  }
  func.func @transform_4(%arg0: i32) -> (i32, i32) {
    %c0_i32 = arith.constant 0 : i32
    %c0_i32_0 = arith.constant 0 : i32
    %c0_i32_1 = arith.constant 0 : i32
    return %c0_i32, %c0_i32_0 : i32, i32
  }
  func.func @transform_5(%arg0: i32) -> (i32, i32) {
    %c0_i32 = arith.constant 0 : i32
    %c0_i32_0 = arith.constant 0 : i32
    %c0_i32_1 = arith.constant 0 : i32
    return %c0_i32, %c0_i32_0 : i32, i32
  }
  func.func @transform_6(%arg0: i32) -> (i32, i32) {
    %c0_i32 = arith.constant 0 : i32
    %c0_i32_0 = arith.constant 0 : i32
    %c0_i32_1 = arith.constant 0 : i32
    return %c0_i32, %c0_i32_0 : i32, i32
  }
  func.func @transform_7(%arg0: i32) -> (i32, i32) {
    %c0_i32 = arith.constant 0 : i32
    %c0_i32_0 = arith.constant 0 : i32
    %c0_i32_1 = arith.constant 0 : i32
    return %c0_i32, %c0_i32_0 : i32, i32
  }
  func.func @transform_8(%arg0: i32) -> (i32, i32) {
    %c0_i32 = arith.constant 0 : i32
    %c0_i32_0 = arith.constant 0 : i32
    %c0_i32_1 = arith.constant 0 : i32
    return %c0_i32, %c0_i32_0 : i32, i32
  }
  func.func @transform_9(%arg0: i32) -> (i32, i32) {
    %c0_i32 = arith.constant 0 : i32
    %c0_i32_0 = arith.constant 0 : i32
    %c0_i32_1 = arith.constant 0 : i32
    return %c0_i32, %c0_i32_0 : i32, i32
  }
  func.func @transform_10(%arg0: i32) -> (i32, i32) {
    %c0_i32 = arith.constant 0 : i32
    %c0_i32_0 = arith.constant 0 : i32
    return %arg0, %c0_i32 : i32, i32
  }
}

</mosaic_0001>

<bundles_post_ra>
// kernel: decoder_attn_step.1
= control target key start
LH: loop header
LB: loop body
LE: loop exit
PB: predicated region body
PF: predicated region fallthrough
CT: control target
= control target key end

     0   :  { %15 = vsyncpa [#allocation3], 0  ;;  %s3782_s0 = inlined_call_operand.vmem [shape: f32[16,8], index: 0, kind: input, shape index: {}]   ;;  %s3783_s1 = inlined_call_operand.vmem [shape: f32[16,32], index: 1, kind: input, shape index: {}]   ;;  %s3784_s2 = inlined_call_operand.hbm [shape: f32[16,16,32], index: 2, kind: input, shape index: {}]   ;;  %s3785_s3 = inlined_call_operand.vmem [shape: f32[64,32], index: 3, kind: input, shape index: {}]   ;;  %s3786_s4 = inlined_call_operand.vmem [shape: f32[2,32], index: 4, kind: input, shape index: {}]   ;;  %s3787_s5 = inlined_call_operand.vmem [shape: f32[40,96], index: 5, kind: input, shape index: {}]   ;;  %s3788_s6 = inlined_call_operand.vmem [shape: f32[32,96], index: 6, kind: input, shape index: {}]   ;;  %s3789_s7 = inlined_call_operand.vmem [shape: f32[2,96], index: 7, kind: input, shape index: {}]   ;;  %s3790_s8 = inlined_call_operand.vmem [shape: f32[72,8], index: 8, kind: input, shape index: {}]   ;;  %s3791_s9 = inlined_call_operand.vmem [shape: f32[1,8], index: 9, kind: input, shape index: {}]   ;;  %s3792_s10 = inlined_call_operand.vmem [shape: f32[16,128], index: 10, kind: output, shape index: {}]  }
   0x1   :  { %17 = vsyncpa [#allocation3 + $0x1], 0  ;;  %s3279_s13 = smov 0   ;;  %s3281_s14 = smov 0  }
   0x2   :  { %s3283_s15 = smov 0   ;;  %s3285_s16 = smov 0  }
   0x3 LB: > { %s3298_s17 = sadd.s32 4294967295, %s3210_s16   ;;  %s3301_s18 = sadd.s32 1, %s3210_s16   ;;  %s3210_s16 = sphi %s3285_s16, %s3801_s16   ;;  %s3206_s15 = sphi %s3283_s15, %s3800_s15   ;;  %s3202_s14 = sphi %s3281_s14, %s3799_s14   ;;  %s3198_s13 = sphi %s3279_s13, %s3798_s13  }
   0x4   : > { %s79_s19 = ssub.s32 %s3210_s16, %s3301_s18  ;;  %s82_s20 = sadd.s32 1, %s3206_s15 }
   0x5   : > { %p80_p0 = scmp.eq.s32.totalorder %s79_s19, 0  ;;  %p89_p1 = scmp.ne.s32.totalorder %s3206_s15, %s3202_s14 }
   0x6   : > { %p90_p2 = scmp.eq.s32.totalorder %s3210_s16, 0  ;;  %p95_p3 = scmp.ne.s32.totalorder %s3202_s14, %s3198_s13 }
   0x7   : > { %s3311_s21 = scalar_select %p80_p0, %s3206_s15, %s82_s20  }
   0x8   : > { %p91_p4 = por %p90_p2, %p89_p1  ;;  %p96_p5 = scmp.eq.s32.totalorder %s3298_s17, 0 }
   0x9   : > { %p3032_p6 = scmp.lt.s32.totalorder %s3210_s16, 2  ;;  %s327_s23 = sand.u32 1, %s3206_s15  }
   0xa   : > { %p3315_p7 = por %p96_p5, %p95_p3  ;;  %s2564_s24 = sshll.u32 %s327_s23, 7 }
   0xb   : > { %s2633_s25 = sshll.u32 %s3210_s16, 11  ;;  %s331_s29 = scalar_lea.vmem [#allocation2], %s2564_s24 }
   0xc   : > { %s3324_s28 = scalar_lea.hbm %s3784_s2, %s2633_s25  ;;  %s339_s30 = sshll.u32 %s331_s29, 4  ;;  %s3326_s30 = int_to_ptr.vmem [resolvable:$true] %s339_s30 }
   0xd   : > { %p3328_p8 = pnand %p3032_p6, %p91_p4  ;;  %s3333_s12 = scalar_lea.sflag [#allocation3], %s327_s23 }
   0xe   : > { %s3146_s13 = scalar_lea.hbm %s3324_s28, 2048  ;;  %s3151_s24 = scalar_lea.hbm %s3784_s2, 4096 }
   0xf   : > { %p3147_p10 = scmp.ne.s32.totalorder %s3324_s28, %s3146_s13  ;;  %p3148_p11 = pneg %p3328_p8 }
  0x10   : > { %p3152_p0 = scmp.lt.u32.totalorder %s3324_s28, %s3784_s2  ;;  %p3153_p1 = scmp.lt.u32.totalorder %s3151_s24, %s3146_s13 }
  0x11   : > { %p3149_p12 = pnand %p3148_p11, %p3147_p10  ;;  %p3155_p3 = scmp.lt.u32.totalorder %s3146_s13, %s3324_s28 }
  0x12   : > { %p3154_p2 = por %p3153_p1, %p3152_p0 }
  0x13   : > { %p3150_p13 = pneg %p3149_p12 }
  0x14   : > { %p3156_p4 = por %p3155_p3, %p3154_p2 }
  0x16   : > { %p3157_p5 = pnand %p3156_p4, %p3150_p13 }
  0x18   : > { %3160 = shalt.err (!%p3157_p5)
}
  0x19   : > { %s3161_s23 = scalar_lea.vmem %s3326_s30, 2048  ;;  %s3212_s27 = smov [#allocation2]  }
  0x1a   : > { %p3162_p6 = scmp.ne.s32.totalorder %s3326_s30, %s3161_s23  ;;  %s3166_s29 = sshll.u32 %s3212_s27, 4  ;;  %s3167_s29 = int_to_ptr.vmem [resolvable:$false] %s3166_s29 }
  0x1b   : > { %s3168_s19 = scalar_lea.vmem %s3167_s29, 4096  ;;  %p3169_p9 = scmp.lt.s32.totalorder %s3326_s30, %s3167_s29 }
  0x1c   : > { %p3164_p10 = pnand %p3162_p6, %p3148_p11  ;;  %p3170_p0 = scmp.lt.s32.totalorder %s3168_s19, %s3161_s23 }
  0x1e   : > { %p3165_p12 = pneg %p3164_p10  ;;  %p3171_p1 = por %p3170_p0, %p3169_p9 }
  0x20   : > { %p3172_p2 = pnand %p3171_p1, %p3165_p12 }
  0x22   : > { %3175 = shalt.err (!%p3172_p2)
}
  0x23   : > { %s3213_s13 = smov 128   ;;  %s3214_s20 = smov 8  }
  0x24   : > { %3031 = dma.hbm_to_vmem [thread:$0]  (!%p3328_p8), %s3324_s28, 2048, %s3326_s30, %s3333_s12, %s3213_s13, %s3213_s13, %s3214_s20  }
  0x25   : > { %p347_p11 = scmp.lt.s32.totalorder %s3210_s16, 3  ;;  %p3795_p13 = scmp.ge.s32.totalorder %s3210_s16, 1 }
  0x27   : > { %p348_p3 = pnand %p3795_p13, %p347_p11 }
  0x28   : > { %s353_s24 = sand.u32 (!%p348_p3), 1, %s3202_s14  }
  0x29   : > { %351 = sbr.rel (%p348_p3) target bundleno = 1880 (0x758), region = 60  ;;  %s2569_s25 = sshll.u32 (!%p348_p3), %s353_s24, 7 }
  0x2a   : > { %s354_s26 = scalar_lea.sflag (!%p348_p3), [#allocation3], %s353_s24  ;;  %s3365_s23 = scalar_lea.vmem (!%p348_p3), [#allocation2], %s2569_s25 }
  0x30   : > { %3193 = dma.done.wait (%p3315_p7), %s354_s26, 2048  }
  0x31   : > { %3195 = vsyncadd (%p3315_p7), %s354_s26, 4294965248  ;;  %p401_p9 = scmp.lt.s32.totalorder %s3298_s17, 1  ;;  %v3215_v0 = vmov 0.0|0.0   ;;  %vm3216_vm0 = vmmov 0   ;;  %v3217_v1 = vmov 0.0   ;;  %v432_v2 = vld [vmem:[%s3785_s3] sm:$0xff]  ;;  %v714_v41 = vlaneseq }
  0x32   : > { %2928 = vmatprep.subr.bf16.mxu0 %v3215_v0  ;;  %2736 = vmatprep.mubr.msk.f32.mxu0 %vm3216_vm0, %v3217_v1  ;;  %v433_v3 = vld [vmem:[%s3785_s3 + $0x8] sm:$0xff]  ;;  %v436_v4 = vld [vmem:[%s3785_s3 + $0x20] sm:$0xff]  ;;  %v434_v7 = vld [vmem:[%s3785_s3 + $0x10] sm:$0xff]  ;;  %vm442_vm1 = vcmask 261120   ;;  %v3218_v39 = vmov 1966171168  }
  0x33   : > { %s3803_s17 = smov (!%p401_p9, %s3298_s17), 1  ;;  %v2929_v5 = vpack.c.bf16 %v433_v3, %v432_v2  ;;  %v437_v6 = vld [vmem:[%s3785_s3 + $0x28] sm:$0xff]  ;;  %v435_v8 = vld [vmem:[%s3785_s3 + $0x18] sm:$0xff]  ;;  %v438_v10 = vld [vmem:[%s3785_s3 + $0x30] sm:$0xff]  ;;  %v712_v40 = vunpack.c.l.s4 %v3218_v39  ;;  %v715_v43 = vshrl.u32 %v714_v41, 7  ;;  %vm1462_vm3 = vcmask 122880  }
  0x34   : > { %s3394_s25 = sshll.u32 %s3803_s17, 3  ;;  %v2934_v9 = vpack.c.bf16 %v437_v6, %v436_v4  ;;  %v439_v11 = vld [vmem:[%s3785_s3 + $0x38] sm:$0xff]  ;;  %v2932_v12 = vpack.c.bf16 %v435_v8, %v434_v7  ;;  %v3403_v14 = vld [vmem:[%s3365_s23 + $0x20] sm:$0xff]  ;;  %v3406_v15 = vld [vmem:[%s3365_s23 + $0x28] sm:$0xff]  ;;  %vm1535_vm4 = vcmask 130048   ;;  %vm2145_vm5 = vcmask 1041409  }
  0x35   : > { %2930 = vmatpush3.bf16.msra.mxu0 %v2929_v5  ;;  %v2938_v13 = vpack.c.bf16 %v439_v11, %v438_v10  ;;  %v3409_v16 = vld [vmem:[%s3365_s23 + $0x30] sm:$0xff]  ;;  %s408_s11 = scalar_lea.vmem %s3783_s1, %s3394_s25  ;;  %v2981_v17 = vpack.c.bf16 %v3406_v15, %v3403_v14  ;;  %v3419_v18 = vld [vmem:[%s3365_s23 + $0x38] sm:$0xff]  ;;  %v3422_v19 = vld [vmem:[%s3365_s23] sm:$0xff]  ;;  %2753 = vmatprep.mubr.msk.f32.mxu1 %vm442_vm1, %v3403_v14  ;;  %v713_v42 = vunpack.c.0.s8 %v712_v40  ;;  %v3513_v48 = vsub.s32 0, %v715_v43  ;;  %s3219_s24 = smov 8  }
  0x36   : > { %3022 = vmatprep.subr.bf16.mxu1 %v2934_v9  ;;  %2931 = vmatprep.subr.bf16.mxu0 %v3215_v0  ;;  %v3425_v20 = vld [vmem:[%s3365_s23 + $0x8] sm:$0xff]  ;;  %v2984_v21 = vpack.c.bf16 %v3419_v18, %v3409_v16  ;;  %v3434_v23 = vld [vmem:[%s3365_s23 + $0x40] sm:$0xff]  ;;  %v3440_v25 = vld [vmem:[%s3365_s23 + $0x10] sm:$0xff]  ;;  %vm2148_vm6 = vcmask 1042434   ;;  %vm2151_vm7 = vcmask 1043459   ;;  %vm2154_vm8 = vcmask 1044484  }
  0x37   : > { %3024 = vmatpush3.bf16.msra.mxu1 %v2934_v9  ;;  %v2975_v22 = vpack.c.bf16 %v3425_v20, %v3422_v19  ;;  %v3437_v24 = vld [vmem:[%s3365_s23 + $0x48] sm:$0xff]  ;;  %v3445_v27 = vld [vmem:[%s3365_s23 + $0x18] sm:$0xff]  ;;  %v3448_v28 = vld [vmem:[%s3365_s23 + $0x50] sm:$0xff]  ;;  %v716_v44 = vsub.s32 %v713_v42, %v715_v43  ;;  %vm2157_vm9 = vcmask 1045509   ;;  %vm2160_vm10 = vcmask 1046534   ;;  %s3220_s26 = smov 32  }
  0x38   : > { %3023 = vmatprep.subr.bf16.mxu1 %v2938_v13  ;;  %v2987_v26 = vpack.c.bf16 %v3437_v24, %v3434_v23  ;;  %v3451_v29 = vld [vmem:[%s3365_s23 + $0x58] sm:$0xff]  ;;  %v3453_v30 = vld [vmem:[%s408_s11] sm:$0xff]  ;;  %v2978_v31 = vpack.c.bf16 %v3445_v27, %v3440_v25  ;;  %v3463_v34 = vld [vmem:[%s3365_s23 + $0x68] sm:$0xff]  ;;  %vm2163_vm11 = vcmask 1047559   ;;  %s3221_s30 = smov 64   ;;  %s404_s11 = scalar_lea.vmem %s3782_s0, %s3394_s25  ;;  %vm2168_vm12 = vcmask 64512  }
  0x39   : > { %2933 = vmatpush3.bf16.msra.mxu0 %v2932_v12  ;;  %v2990_v32 = vpack.c.bf16 %v3451_v29, %v3448_v28  ;;  %v3460_v33 = vld [vmem:[%s3365_s23 + $0x60] sm:$0xff]  ;;  %v3468_v36 = vld [vmem:[%s3365_s23 + $0x70] sm:$0xff]  ;;  %v3471_v37 = vld [vmem:[%s3365_s23 + $0x78] sm:$0xff]  ;;  %vm2180_vm13 = vcmask 326656   ;;  %s3222_s23 = smov 96   ;;  %vm2374_vm14 = vcmask 523264  }
  0x3a   : > { %2935 = vmatprep.subr.bf16.mxu0 %v2934_v9  ;;  %v2993_v35 = vpack.c.bf16 %v3463_v34, %v3460_v33  ;;  %v2996_v38 = vpack.c.bf16 %v3471_v37, %v3468_v36  ;;  %v3520_v2 = vld [vmem:[%s3786_s4] ss:$0 sm:$0xff]  ;;  %vm3546_vm2 = vmpackc.low %vm442_vm1, %vm442_vm1  ;;  %vm2392_vm15 = vcmask 588800  }
  0x3b   : > { %3025 = vmatpush3.bf16.msra.mxu1 %v2938_v13 }
  0x3c   : > { %2737 = vmatmul.mubr.msk.f32.vlgmr.msra.gmra.mrb[0].mxu0 %vm442_vm1, %v3453_v30  ;;  %2958 = vmatprep.subr.bf16.mxu1 %v3215_v0 }
  0x3d   : > { %2937 = vmatpush3.bf16.msra.mxu0 %v2934_v9  ;;  %2747 = vmatprep.mubr.msk.f32.mxu0 %vm442_vm1, %v3422_v19 }
  0x3e   : > { %2754 = vmatmul.mubr.msk.f32.vlgmr.msra.gmra.mrb[0].mxu1 %vm442_vm1, %v3406_v15  ;;  %2939 = vmatprep.subr.bf16.mxu0 %v2938_v13 }
  0x3f   : > { %2756 = vmatprep.mubr.msk.f32.mxu1 %vm442_vm1, %v3409_v16 }
  0x41   : > { %2941 = vmatpush3.bf16.msra.mxu0 %v2938_v13 }
  0x42   : > { %2757 = vmatmul.mubr.msk.f32.gmra.mrb[2].mxu1 %vm442_vm1, %v3419_v18  ;;  %2942 = vmatprep.subr.bf16.mxu0 %v3215_v0 }
  0x43   : > { %2759 = vmatprep.mubr.msk.f32.mxu1 %vm442_vm1, %v3434_v23 }
  0x44   : > { %2748 = vmatmul.mubr.msk.f32.vlgmr.msra.gmra.mrb[2].mxu0 %vm442_vm1, %v3425_v20 }
  0x45   : > { %2750 = vmatprep.mubr.msk.f32.mxu0 %vm442_vm1, %v3440_v25 }
  0x46   : > { %2760 = vmatmul.mubr.msk.f32.gmra.mrb[4].mxu1 %vm442_vm1, %v3437_v24 }
  0x47   : > { %2762 = vmatprep.mubr.msk.f32.mxu1 %vm442_vm1, %v3448_v28 }
  0x48   : > { %2751 = vmatmul.mubr.msk.f32.gmra.mrb[4].mxu0 %vm442_vm1, %v3445_v27 }
  0x49   : > { %2775 = vmatprep.mubr.msk.f32.mxu0 %vm3216_vm0, %v3217_v1 }
  0x4a   : > { %2763 = vmatmul.mubr.msk.f32.gmra.mrb[6].mxu1 %vm442_vm1, %v3451_v29 }
  0x4b   : > { %2765 = vmatprep.mubr.msk.f32.mxu1 %vm442_vm1, %v3460_v33 }
  0x4e   : > { %2766 = vmatmul.mubr.msk.f32.gmra.mrb[8].mxu1 %vm442_vm1, %v3463_v34 }
  0x4f   : > { %2768 = vmatprep.mubr.msk.f32.mxu1 %vm442_vm1, %v3468_v36  ;;  %v2255_v36 = vld [vmem:[%s3788_s6 + $0x8] sm:$0xff] }
  0x52   : > { %2769 = vmatmul.mubr.msk.f32.gmra.mrb[10].mxu1 %vm442_vm1, %v3471_v37  ;;  %v2256_v37 = vld [vmem:[%s3788_s6 + $0x10] sm:$0xff] }
  0x53   : > { %2803 = vmatprep.mubr.msk.f32.mxu1 %vm3216_vm0, %v3217_v1 }
 0x10f   : > { %v512_v45 = vpop.f32.mrb[0].mxu0 }
 0x110   : > { %v710_v46 = vcombine.high %v512_v45, %v512_v45  ;;  %v717_v47 = vrot.slane %v512_v45, %v716_v44  ;;  %v2738_v49 = vpop.f32.mrb[1].mxu0 }
 0x111   : > { %v2755_v50 = vpop.f32.mrb[0].mxu1 }
 0x112   : > { %v724_v51 = vrot.slane %v710_v46, %v716_v44  ;;  %v725_v52 = vcombine.high %v717_v47, %v717_v47  ;;  %v733_v53 = vrot.slane %v717_v47, %v716_v44  ;;  %v650_v54 = vpop.f32.mrb[1].mxu1 }
 0x114   : > { %v726_v55 = vcombine.high %v724_v51, %v724_v51  ;;  %v747_v56 = vrot.slane %v725_v52, %v716_v44  ;;  %v755_v57 = vcombine.high %v733_v53, %v733_v53  ;;  %v762_v58 = vrot.slane %v733_v53, %v3513_v48 }
 0x115   : > { %v2758_v59 = vpop.f32.mrb[2].mxu1  ;;  %v740_v60 = vrot.slane %v724_v51, %v716_v44 }
 0x116   : > { %v770_v61 = vrot.slane %v755_v57, %v3513_v48  ;;  %v757_v62 = vcombine.high %v747_v56, %v747_v56  ;;  %v660_v63 = vpop.f32.mrb[3].mxu1  ;;  %v754_v5 = vrot.slane %v726_v55, %v716_v44  ;;  %v766_v13 = vrot.slane %v747_v56, %v3513_v48 }
 0x117   : > { %v2749_v3 = vpop.f32.mrb[2].mxu0  ;;  %v778_v4 = vrot.slane %v740_v60, %v3513_v48  ;;  %v756_v43 = vcombine.high %v740_v60, %v740_v60 }
 0x118   : > { %v804_v6 = vadd.f32 %v2755_v50, %v770_v61  ;;  %v803_v7 = vadd.f32 %v770_v61, %v650_v54  ;;  %v774_v8 = vrot.slane %v757_v62, %v3513_v48  ;;  %v800_v9 = vadd.f32 %v2749_v3, %v762_v58  ;;  %v630_v10 = vpop.f32.mrb[3].mxu0 }
 0x119   : > { %v799_v11 = vadd.f32 %v762_v58, %v630_v10  ;;  %v2761_v12 = vpop.f32.mrb[4].mxu1  ;;  %v782_v53 = vrot.slane %v754_v5, %v3513_v48  ;;  %v786_v3 = vrot.slane %v756_v43, %v3513_v48 }
 0x11a   : > { %v824_v39 = vadd.f32 %v3520_v2, %v804_v6  ;;  %v823_v40 = vadd.f32 %v3520_v2, %v803_v7  ;;  %v806_v41 = vadd.f32 %v2758_v59, %v774_v8  ;;  %v670_v42 = vpop.f32.mrb[5].mxu1  ;;  %v820_v45 = vadd.f32 %v3520_v2, %v800_v9 }
 0x11b   : > { %v805_v44 = vadd.f32 %v774_v8, %v660_v63  ;;  %v808_v46 = vadd.f32 %v2761_v12, %v778_v4  ;;  %v807_v47 = vadd.f32 %v778_v4, %v670_v42  ;;  %v2752_v49 = vpop.f32.mrb[4].mxu0  ;;  %v819_v55 = vadd.f32 %v3520_v2, %v799_v11 }
 0x11c   : > { %3076 = vtanh.f32 %v824_v39  ;;  %v826_v50 = vadd.f32 %v3520_v2, %v806_v41  ;;  %v802_v51 = vadd.f32 %v2752_v49, %v766_v13  ;;  %v640_v52 = vpop.f32.mrb[5].mxu0  ;;  %v758_v4 = vcombine.high %v754_v5, %v754_v5 }
 0x11d   : > { %3078 = vtanh.f32 %v823_v40  ;;  %v825_v54 = vadd.f32 %v3520_v2, %v805_v44  ;;  %v2764_v56 = vpop.f32.mrb[6].mxu1  ;;  %v828_v57 = vadd.f32 %v3520_v2, %v808_v46  ;;  %v801_v58 = vadd.f32 %v766_v13, %v640_v52 }
 0x11e   : > { %3080 = vtanh.f32 %v826_v50  ;;  %v810_v59 = vadd.f32 %v2764_v56, %v782_v53  ;;  %v680_v60 = vpop.f32.mrb[7].mxu1  ;;  %v827_v61 = vadd.f32 %v3520_v2, %v807_v47  ;;  %v822_v63 = vadd.f32 %v3520_v2, %v802_v51 }
 0x11f   : > { %3082 = vtanh.f32 %v820_v45  ;;  %v809_v62 = vadd.f32 %v782_v53, %v680_v60  ;;  %v821_v6 = vadd.f32 %v3520_v2, %v801_v58  ;;  %v790_v39 = vrot.slane %v758_v4, %v3513_v48 }
 0x120   : > { %3084 = vtanh.f32 %v825_v54  ;;  %v830_v8 = vadd.f32 %v3520_v2, %v810_v59 }
 0x121   : > { %3086 = vtanh.f32 %v819_v55  ;;  %v2767_v7 = vpop.f32.mrb[8].mxu1  ;;  %v829_v11 = vadd.f32 %v3520_v2, %v809_v62 }
 0x122   : > { %3088 = vtanh.f32 %v828_v57  ;;  %v812_v9 = vadd.f32 %v2767_v7, %v786_v3  ;;  %v690_v10 = vpop.f32.mrb[9].mxu1 }
 0x123   : > { %3090 = vtanh.f32 %v827_v61  ;;  %v811_v12 = vadd.f32 %v786_v3, %v690_v10  ;;  %v441_v3 = vld [vmem:[%s3786_s4 + $0x1] sm:$0x1] }
 0x124   : > { %3092 = vtanh.f32 %v822_v63  ;;  %v832_v13 = vadd.f32 %v3520_v2, %v812_v9 }
 0x125   : > { %3094 = vtanh.f32 %v821_v6  ;;  %v831_v5 = vadd.f32 %v3520_v2, %v811_v12  ;;  %v2770_v40 = vpop.f32.mrb[10].mxu1 }
 0x126   : > { %v3077_v41 = vpop.eup %3076  ;;  %3096 = vtanh.f32 %v830_v8  ;;  %v814_v42 = vadd.f32 %v2770_v40, %v790_v39  ;;  %v700_v43 = vpop.f32.mrb[11].mxu1 }
 0x127   : > { %v3079_v45 = vpop.eup %3078  ;;  %3098 = vtanh.f32 %v829_v11  ;;  %v813_v44 = vadd.f32 %v790_v39, %v700_v43 }
 0x128   : > { %v3081_v46 = vpop.eup %3080  ;;  %3100 = vtanh.f32 %v832_v13  ;;  %v834_v47 = vadd.f32 %v3520_v2, %v814_v42  ;;  %v2951_v49 = vpack.c.bf16 %v3077_v41, %v3079_v45 }
 0x129   : > { %v3083_v50 = vpop.eup %3082  ;;  %3102 = vtanh.f32 %v831_v5  ;;  %v833_v48 = vadd.f32 %v3520_v2, %v813_v44 }
 0x12a   : > { %v3085_v51 = vpop.eup %3084  ;;  %3104 = vtanh.f32 %v834_v47 }
 0x12b   : > { %v3087_v52 = vpop.eup %3086  ;;  %3106 = vtanh.f32 %v833_v48  ;;  %v2955_v54 = vpack.c.bf16 %v3081_v46, %v3085_v51 }
 0x12c   : > { %v3089_v55 = vpop.eup %3088  ;;  %v2943_v56 = vpack.c.bf16 %v3083_v50, %v3087_v52 }
 0x12d   : > { %v3091_v57 = vpop.eup %3090 }
 0x12e   : > { %v3093_v58 = vpop.eup %3092  ;;  %2945 = vmatpush3.bf16.xpose.msk.msra.mxu0 %vm3546_vm2, %v2943_v56  ;;  %v2959_v59 = vpack.c.bf16 %v3089_v55, %v3091_v57 }
 0x12f   : > { %v3095_v2 = vpop.eup %3094  ;;  %2946 = vmatprep.subr.bf16.mxu0 %v3215_v0 }
 0x130   : > { %v3097_v60 = vpop.eup %3096  ;;  %2961 = vmatpush3.bf16.xpose.msk.msra.mxu1 %vm3546_vm2, %v2959_v59  ;;  %v2947_v61 = vpack.c.bf16 %v3093_v58, %v3095_v2 }
 0x131   : > { %v3099_v62 = vpop.eup %3098  ;;  %2966 = vmatprep.subr.bf16.mxu1 %v3215_v0 }
 0x132   : > { %v3101_v63 = vpop.eup %3100  ;;  %v2963_v4 = vpack.c.bf16 %v3097_v60, %v3099_v62 }
 0x133   : > { %v3103_v6 = vpop.eup %3102 }
 0x134   : > { %v3105_v7 = vpop.eup %3104  ;;  %v2967_v8 = vpack.c.bf16 %v3101_v63, %v3103_v6 }
 0x135   : > { %v3107_v9 = vpop.eup %3106  ;;  %2776 = vmatmul.mubr.msk.f32.vlgmr.msra.gmra.mrb[6].mxu0 %vm442_vm1, %v441_v3 }
 0x136   : > { %2949 = vmatpush3.bf16.xpose.msk.msra.mxu0 %vm3546_vm2, %v2947_v61  ;;  %2782 = vmatprep.mubr.msk.f32.mxu0 %vm3216_vm0, %v3217_v1  ;;  %v2971_v10 = vpack.c.bf16 %v3105_v7, %v3107_v9 }
 0x137   : > { %2804 = vmatmul.mubr.msk.f32.vlgmr.msra.gmra.mrb[12].mxu1 %vm442_vm1, %v441_v3  ;;  %2950 = vmatprep.subr.bf16.mxu0 %v3215_v0 }
 0x138   : > { %2969 = vmatpush3.bf16.xpose.msk.msra.mxu1 %vm3546_vm2, %v2967_v8  ;;  %2817 = vmatprep.mubr.msk.f32.mxu1 %vm3216_vm0, %v3217_v1 }
 0x139   : > { %2974 = vmatprep.subr.bf16.mxu1 %v3215_v0 }
 0x13d   : > { %2783 = vmatmul.mubr.msk.f32.vlgmr.msra.gmra.mrb[8].mxu0 %vm442_vm1, %v441_v3 }
 0x13e   : > { %2953 = vmatpush3.bf16.xpose.msk.msra.mxu0 %vm3546_vm2, %v2951_v49  ;;  %2789 = vmatprep.mubr.msk.f32.mxu0 %vm3216_vm0, %v3217_v1 }
 0x13f   : > { %2954 = vmatprep.subr.bf16.mxu0 %v3215_v0  ;;  %2818 = vmatmul.mubr.msk.f32.vlgmr.msra.gmra.mrb[14].mxu1 %vm442_vm1, %v441_v3 }
 0x140   : > { %2976 = vmatpush3.bf16.msra.mxu1 %v2975_v22  ;;  %2831 = vmatprep.mubr.msk.f32.mxu1 %vm3216_vm0, %v3217_v1 }
 0x141   : > { %2977 = vmatprep.subr.bf16.mxu1 %v3215_v0 }
 0x145   : > { %2790 = vmatmul.mubr.msk.f32.vlgmr.msra.gmra.mrb[10].mxu0 %vm442_vm1, %v441_v3 }
 0x146   : > { %2957 = vmatpush3.bf16.xpose.msk.msra.mxu0 %vm3546_vm2, %v2955_v54  ;;  %2796 = vmatprep.mubr.msk.f32.mxu0 %vm3216_vm0, %v3217_v1 }
 0x147   : > { %2962 = vmatprep.subr.bf16.mxu0 %v3215_v0 }
 0x14d   : > { %2797 = vmatmul.mubr.msk.f32.vlgmr.msra.gmra.mrb[12].mxu0 %vm442_vm1, %v441_v3 }
 0x14e   : > { %2965 = vmatpush3.bf16.xpose.msk.msra.mxu0 %vm3546_vm2, %v2963_v4  ;;  %2810 = vmatprep.mubr.msk.f32.mxu0 %vm3216_vm0, %v3217_v1 }
 0x14f   : > { %2970 = vmatprep.subr.bf16.mxu0 %v3215_v0 }
 0x155   : > { %2811 = vmatmul.mubr.msk.f32.vlgmr.msra.gmra.mrb[14].mxu0 %vm442_vm1, %v441_v3 }
 0x156   : > { %2973 = vmatpush3.bf16.xpose.msk.msra.mxu0 %vm3546_vm2, %v2971_v10  ;;  %2824 = vmatprep.mubr.msk.f32.mxu0 %vm3216_vm0, %v3217_v1 }
 0x157   : > { %2980 = vmatprep.subr.bf16.mxu0 %v3215_v0 }
 0x15d   : > { %2825 = vmatmul.mubr.msk.f32.vlgmr.msra.gmra.mrb[16].mxu0 %vm442_vm1, %v441_v3 }
 0x15e   : > { %2982 = vmatpush3.bf16.msra.mxu0 %v2981_v17  ;;  %2845 = vmatprep.mubr.msk.f32.mxu0 %vm3216_vm0, %v3217_v1 }
 0x15f   : > { %2986 = vmatprep.subr.bf16.mxu0 %v3215_v0 }
 0x208   : > { %v926_v19 = vpop.f32.mrb[6].mxu0 }
 0x209   : > { %v2777_v20 = vpop.f32.mrb[7].mxu0  ;;  %v1463_v22 = vsel %vm1462_vm3, %v926_v19, -inf }
 0x20a   : > { %1464 = vmax.xlane.f32.xlu0 %v1463_v22  ;;  %v1230_v11 = vpop.f32.mrb[12].mxu1 }
 0x20b   : > { %v2805_v12 = vpop.f32.mrb[13].mxu1  ;;  %v1475_v15 = vsel %vm1462_vm3, %v1230_v11, -inf }
 0x210   : > { %v1002_v13 = vpop.f32.mrb[8].mxu0 }
 0x211   : > { %v2784_v39 = vpop.f32.mrb[9].mxu0  ;;  %v1466_v5 = vsel %vm1462_vm3, %v1002_v13, -inf }
 0x212   : > { %1467 = vmax.xlane.f32.xlu0 %v1466_v5  ;;  %v1382_v14 = vpop.f32.mrb[14].mxu1  ;;  %v2257_v5 = vld [vmem:[%s3788_s6 + $0x18] sm:$0xff] }
 0x213   : > { %v2819_v17 = vpop.f32.mrb[15].mxu1  ;;  %v1481_v40 = vsel %vm1462_vm3, %v1382_v14, -inf }
 0x216   : > { %1476 = vmax.xlane.f32.xlu0 %v1475_v15  ;;  %v2171_v15 = vld [vmem:[%s3787_s5 + $0x8] sm:$0xff] }
 0x218   : > { %v1078_v41 = vpop.f32.mrb[10].mxu0 }
 0x219   : > { %v2791_v42 = vpop.f32.mrb[11].mxu0  ;;  %v1469_v43 = vsel %vm1462_vm3, %v1078_v41, -inf }
 0x21a   : > { %1482 = vmax.xlane.f32.xlu0 %v1481_v40  ;;  %1470 = vmax.xlane.f32.xlu1 %v1469_v43  ;;  %v2172_v40 = vld [vmem:[%s3787_s5 + $0x10] sm:$0xff]  ;;  %v3008_v42 = vpack.c.bf16 %v2257_v5, %v2256_v37 }
 0x220   : > { %v1154_v45 = vpop.f32.mrb[12].mxu0 }
 0x221   : > { %v2798_v44 = vpop.f32.mrb[13].mxu0  ;;  %v1472_v46 = vsel %vm1462_vm3, %v1154_v45, -inf }
 0x222   : > { %1473 = vmax.xlane.f32.xlu1 %v1472_v46 }
 0x228   : > { %v1306_v47 = vpop.f32.mrb[14].mxu0 }
 0x229   : > { %v2812_v49 = vpop.f32.mrb[15].mxu0  ;;  %v1478_v50 = vsel %vm1462_vm3, %v1306_v47, -inf }
 0x22a   : > { %1479 = vmax.xlane.f32.xlu1 %v1478_v50 }
 0x230   : > { %v3616_v48 = vpop.f32.mrb[16].mxu0 }
 0x231   : > { %v2826_v51 = vpop.f32.mrb[17].mxu0  ;;  %v1484_v52 = vsel %vm1462_vm3, %v3616_v48, -inf }
 0x232   : > { %1485 = vmax.xlane.f32.xlu1 %v1484_v52 }
 0x297   : > { %v1465_v53 = vpop.xlane.xlu0 %1464 }
 0x298   : > { %v1487_v54 = vsub.f32 %v926_v19, %v1465_v53 }
 0x29a   : > { %v1495_v55 = vmul.f32 1.442695, %v1487_v54 }
 0x29c   : > { %3108 = vpow2.f32 %v1495_v55 }
 0x29f   : > { %v1468_v56 = vpop.xlane.xlu0 %1467 }
 0x2a0   : > { %v1488_v57 = vsub.f32 %v1002_v13, %v1468_v56 }
 0x2a2   : > { %v1497_v58 = vmul.f32 1.442695, %v1488_v57 }
 0x2a3   : > { %v1477_v59 = vpop.xlane.xlu0 %1476 }
 0x2a4   : > { %3110 = vpow2.f32 %v1497_v58  ;;  %v1491_v2 = vsub.f32 %v1230_v11, %v1477_v59 }
 0x2a6   : > { %v3109_v60 = vpop.eup %3108  ;;  %v1503_v61 = vmul.f32 1.442695, %v1491_v2 }
 0x2a7   : > { %2832 = vmatmul.mubr.msk.f32.vlgmr.msra.gmra.mrb[16].mxu1 %vm1535_vm4, %v3109_v60  ;;  %v1483_v62 = vpop.xlane.xlu0 %1482  ;;  %v1471_v63 = vpop.xlane.xlu1 %1470  ;;  %v1511_v3 = vsel %vm1462_vm3, %v3109_v60, 0.0 }
 0x2a8   : > { %3112 = vpow2.f32 %v1503_v61  ;;  %v1493_v4 = vsub.f32 %v1382_v14, %v1483_v62  ;;  %v1489_v6 = vsub.f32 %v1078_v41, %v1471_v63  ;;  %1512 = vadd.xlane.f32.xlu0 %v1511_v3  ;;  %2979 = vmatpush3.bf16.msra.mxu1 %v2978_v31  ;;  %v2170_v14 = vld [vmem:[%s3787_s5] sm:$0xff]  ;;  %v2173_v41 = vld [vmem:[%s3787_s5 + $0x18] sm:$0xff] }
 0x2a9   : > { %2838 = vmatprep.mubr.msk.f32.mxu1 %vm3216_vm0, %v3217_v1  ;;  %2983 = vmatprep.subr.bf16.mxu1 %v3215_v0  ;;  %v2999_v17 = vpack.c.bf16 %v2171_v15, %v2170_v14  ;;  %v3002_v43 = vpack.c.bf16 %v2173_v41, %v2172_v40  ;;  %v2625_v15 = vld [vmem:[%s3789_s7 + $0x1] ss:$0 sm:$0xff] }
 0x2aa   : > { %v1507_v7 = vmul.f32 1.442695, %v1493_v4  ;;  %v1499_v8 = vmul.f32 1.442695, %v1489_v6 }
 0x2ac   : > { %3114 = vpow2.f32 %v1507_v7 }
 0x2ad   : > { %3116 = vpow2.f32 %v1499_v8 }
 0x2ae   : > { %v3111_v9 = vpop.eup %3110 }
 0x2af   : > { %2839 = vmatmul.mubr.msk.f32.vlgmr.msra.gmra.mrb[18].mxu1 %vm1535_vm4, %v3111_v9  ;;  %v1474_v10 = vpop.xlane.xlu1 %1473  ;;  %v1514_v19 = vsel %vm1462_vm3, %v3111_v9, 0.0 }
 0x2b0   : > { %v1490_v20 = vsub.f32 %v1154_v45, %v1474_v10  ;;  %1515 = vadd.xlane.f32.xlu0 %v1514_v19  ;;  %2985 = vmatpush3.bf16.msra.mxu1 %v2984_v21 }
 0x2b1   : > { %2852 = vmatprep.mubr.msk.f32.mxu1 %vm3216_vm0, %v3217_v1  ;;  %2989 = vmatprep.subr.bf16.mxu1 %v3215_v0 }
 0x2b2   : > { %v3113_v25 = vpop.eup %3112  ;;  %v1501_v27 = vmul.f32 1.442695, %v1490_v20 }
 0x2b3   : > { %v1523_v31 = vsel %vm1462_vm3, %v3113_v25, 0.0 }
 0x2b4   : > { %3118 = vpow2.f32 %v1501_v27  ;;  %1524 = vadd.xlane.f32.xlu0 %v1523_v31 }
 0x2b6   : > { %v3115_v22 = vpop.eup %3114 }
 0x2b7   : > { %v3117_v11 = vpop.eup %3116  ;;  %v1480_v12 = vpop.xlane.xlu1 %1479  ;;  %v1529_v13 = vsel %vm1462_vm3, %v3115_v22, 0.0 }
 0x2b8   : > { %2846 = vmatmul.mubr.msk.f32.vlgmr.msra.gmra.mrb[18].mxu0 %vm1535_vm4, %v3117_v11  ;;  %v1492_v16 = vsub.f32 %v1306_v47, %v1480_v12  ;;  %1530 = vadd.xlane.f32.xlu0 %v1529_v13  ;;  %v1517_v18 = vsel %vm1462_vm3, %v3117_v11, 0.0 }
 0x2b9   : > { %2988 = vmatpush3.bf16.msra.mxu0 %v2987_v26  ;;  %1518 = vadd.xlane.f32.xlu1 %v1517_v18 }
 0x2ba   : > { %v1505_v21 = vmul.f32 1.442695, %v1492_v16  ;;  %2859 = vmatprep.mubr.msk.f32.mxu0 %vm3216_vm0, %v3217_v1  ;;  %2992 = vmatprep.subr.bf16.mxu0 %v3215_v0 }
 0x2bc   : > { %3120 = vpow2.f32 %v1505_v21  ;;  %2860 = vmatmul.mubr.msk.f32.vlgmr.msra.gmra.mrb[20].mxu0 %vm1535_vm4, %v3113_v25 }
 0x2bd   : > { %2994 = vmatpush3.bf16.msra.mxu0 %v2993_v35  ;;  %2873 = vmatprep.mubr.msk.f32.mxu0 %vm3216_vm0, %v3217_v1 }
 0x2be   : > { %v3119_v39 = vpop.eup %3118  ;;  %2998 = vmatprep.subr.bf16.mxu0 %v3215_v0 }
 0x2bf   : > { %2853 = vmatmul.mubr.msk.f32.vlgmr.msra.gmra.mrb[20].mxu1 %vm1535_vm4, %v3119_v39  ;;  %v1486_v23 = vpop.xlane.xlu1 %1485  ;;  %v1520_v24 = vsel %vm1462_vm3, %v3119_v39, 0.0 }
 0x2c0   : > { %2874 = vmatmul.mubr.msk.f32.vlgmr.msra.gmra.mrb[22].mxu0 %vm1535_vm4, %v3115_v22  ;;  %v1494_v26 = vsub.f32 %v3616_v48, %v1486_v23  ;;  %1521 = vadd.xlane.f32.xlu1 %v1520_v24 }
 0x2c1   : > { %2991 = vmatpush3.bf16.msra.mxu1 %v2990_v32  ;;  %2866 = vmatprep.mubr.msk.f32.mxu1 %vm3216_vm0, %v3217_v1  ;;  %v2254_v32 = vld [vmem:[%s3788_s6] sm:$0xff] }
 0x2c2   : > { %v1509_v33 = vmul.f32 1.442695, %v1494_v26  ;;  %2995 = vmatprep.subr.bf16.mxu1 %v3215_v0  ;;  %2893 = vmatprep.mubr.msk.f32.mxu0 %vm3216_vm0, %v3217_v1 }
 0x2c3   : > { %3000 = vmatpush3.bf16.msra.mxu0 %v2999_v17 }
 0x2c4   : > { %3122 = vpow2.f32 %v1509_v33  ;;  %3001 = vmatprep.subr.bf16.mxu0 %v3215_v0  ;;  %v2174_v33 = vld [vmem:[%s3787_s5 + $0x20] sm:$0xff] }
 0x2c6   : > { %v3121_v34 = vpop.eup %3120 }
 0x2c7   : > { %2867 = vmatmul.mubr.msk.f32.vlgmr.msra.gmra.mrb[22].mxu1 %vm1535_vm4, %v3121_v34  ;;  %v1526_v35 = vsel %vm1462_vm3, %v3121_v34, 0.0  ;;  %3003 = vmatpush3.bf16.msra.mxu0 %v3002_v43 }
 0x2c8   : > { %1527 = vadd.xlane.f32.xlu1 %v1526_v35  ;;  %2997 = vmatpush3.bf16.msra.mxu1 %v2996_v38  ;;  %v3005_v38 = vpack.c.bf16 %v2255_v36, %v2254_v32 }
 0x2c9   : > { %2880 = vmatprep.mubr.msk.f32.mxu1 %vm3216_vm0, %v3217_v1  ;;  %3004 = vmatprep.subr.bf16.mxu1 %v3215_v0 }
 0x2ca   : > { %2891 = vmatprep.subr.mxu0 %v3217_v1 }
 0x2cb   : > { %2892 = vmatpush3.msra.mxu0 %v2174_v33 }
 0x2ce   : > { %v3123_v28 = vpop.eup %3122 }
 0x2cf   : > { %2881 = vmatmul.mubr.msk.f32.vlgmr.msra.gmra.mrb[24].mxu1 %vm1535_vm4, %v3123_v28  ;;  %v1532_v29 = vsel %vm1462_vm3, %v3123_v28, 0.0 }
 0x2d0   : > { %1533 = vadd.xlane.f32.xlu1 %v1532_v29  ;;  %2904 = vmatprep.mubr.msk.f32.mxu1 %vm3216_vm0, %v3217_v1 }
 0x2d1   : > { %3006 = vmatpush3.bf16.msra.mxu1 %v3005_v38 }
 0x2d2   : > { %3007 = vmatprep.subr.bf16.mxu1 %v3215_v0 }
 0x2d5   : > { %3009 = vmatpush3.bf16.msra.mxu1 %v3008_v42  ;;  %v414_v42 = vld [vmem:[%s404_s11] sm:$0xff] }
 0x2d6   : > { %3010 = vmatprep.subr.bf16.mxu1 %v3215_v0 }
 0x2d8   : > { %2905 = vmatmul.mubr.msk.f32.vlgmr.msra.gmra.mrb[26].mxu1 %vm442_vm1, %v3453_v30 }
 0x2d9   : > { %2925 = vmatprep.mubr.msk.f32.mxu1 %vm3216_vm0, %v3217_v1 }
 0x335   : > { %v1513_v45 = vpop.xlane.xlu0 %1512 }
 0x33d   : > { %v1516_v44 = vpop.xlane.xlu0 %1515 }
 0x33e   : > { %3124 = vrcp.f32 %v1516_v44 }
 0x33f   : > { %3126 = vrcp.f32 %v1513_v45  ;;  %v2623_v45 = vld [vmem:[%s3789_s7] ss:$0 sm:$0xff] }
 0x341   : > { %v1525_v54 = vpop.xlane.xlu0 %1524 }
 0x345   : > { %v1531_v60 = vpop.xlane.xlu0 %1530 }
 0x346   : > { %v1519_v49 = vpop.xlane.xlu1 %1518 }
 0x347   : > { %3128 = vrcp.f32 %v1519_v49 }
 0x348   : > { %v3125_v50 = vpop.eup %3124  ;;  %3130 = vrcp.f32 %v1525_v54 }
 0x349   : > { %v3127_v53 = vpop.eup %3126 }
 0x34d   : > { %v1522_v55 = vpop.xlane.xlu1 %1521 }
 0x34e   : > { %3132 = vrcp.f32 %v1522_v55 }
 0x34f   : > { %3134 = vrcp.f32 %v1531_v60  ;;  %v2379_v60 = vld [vmem:[%s3790_s8 + $0x18] sm:$0xff] }
 0x351   : > { %v3129_v59 = vpop.eup %3128 }
 0x352   : > { %v3131_v8 = vpop.eup %3130 }
 0x355   : > { %v1528_v63 = vpop.xlane.xlu1 %1527 }
 0x356   : > { %3136 = vrcp.f32 %v1528_v63  ;;  %v2380_v63 = vld [vmem:[%s3790_s8 + $0x20] sm:$0xff] }
 0x358   : > { %v3133_v9 = vpop.eup %3132 }
 0x359   : > { %v3135_v18 = vpop.eup %3134 }
 0x35d   : > { %v1534_v22 = vpop.xlane.xlu1 %1533 }
 0x35e   : > { %3138 = vrcp.f32 %v1534_v22 }
 0x360   : > { %v3137_v21 = vpop.eup %3136 }
 0x368   : > { %v3139_v32 = vpop.eup %3138 }
 0x37a   : > { %v1605_v46 = vpop.f32.mrb[16].mxu1 }
 0x37b   : > { %v2833_v47 = vpop.f32.mrb[17].mxu1  ;;  %v2128_v56 = vmul.f32 %v3127_v53, %v1605_v46 }
 0x382   : > { %v1678_v48 = vpop.f32.mrb[18].mxu1 }
 0x383   : > { %v2129_v51 = vmul.f32 %v3125_v50, %v1678_v48  ;;  %v2840_v52 = vpop.f32.mrb[19].mxu1 }
 0x385   : > { %v2144_v57 = vrot.slane %v2129_v51, 7 }
 0x387   : > { %v2146_v58 = vsel %vm2145_vm5, %v2144_v57, %v2128_v56  ;;  %v2376_v57 = vld [vmem:[%s3790_s8] sm:$0xff] }
 0x38b   : > { %v1751_v2 = vpop.f32.mrb[18].mxu0 }
 0x38c   : > { %v2130_v61 = vmul.f32 %v3129_v59, %v1751_v2  ;;  %v2847_v62 = vpop.f32.mrb[19].mxu0  ;;  %v2378_v59 = vld [vmem:[%s3790_s8 + $0x10] sm:$0xff] }
 0x38e   : > { %v2147_v3 = vrot.slane %v2130_v61, 6  ;;  %v3014_v61 = vpack.c.bf16 %v2379_v60, %v2378_v59 }
 0x38f   : > { %v1897_v4 = vpop.f32.mrb[20].mxu0 }
 0x390   : > { %v2149_v6 = vsel %vm2148_vm6, %v2147_v3, %v2146_v58  ;;  %v2861_v7 = vpop.f32.mrb[21].mxu0  ;;  %v2132_v10 = vmul.f32 %v3131_v8, %v1897_v4  ;;  %v2377_v58 = vld [vmem:[%s3790_s8 + $0x8] sm:$0xff] }
 0x391   : > { %v3011_v2 = vpack.c.bf16 %v2377_v58, %v2376_v57  ;;  %v2381_v3 = vld [vmem:[%s3790_s8 + $0x28] sm:$0xff]  ;;  %v2383_v7 = vld [vmem:[%s3790_s8 + $0x38] sm:$0xff] }
 0x392   : > { %v1824_v19 = vpop.f32.mrb[20].mxu1  ;;  %v2153_v12 = vrot.slane %v2132_v10, 4  ;;  %v3017_v4 = vpack.c.bf16 %v2381_v3, %v2380_v63 }
 0x393   : > { %v2131_v20 = vmul.f32 %v3133_v9, %v1824_v19  ;;  %v2043_v25 = vpop.f32.mrb[22].mxu0  ;;  %v2854_v27 = vpop.f32.mrb[21].mxu1  ;;  %3012 = vmatpush3.bf16.msra.mxu1 %v3011_v2  ;;  %v2384_v9 = vld [vmem:[%s3790_s8 + $0x40] sm:$0xff] }
 0x394   : > { %v2875_v31 = vpop.f32.mrb[23].mxu0  ;;  %v2134_v39 = vmul.f32 %v3135_v18, %v2043_v25  ;;  %3013 = vmatprep.subr.bf16.mxu1 %v3215_v0 }
 0x395   : > { %v2150_v11 = vrot.slane %v2131_v20, 5 }
 0x396   : > { %v2159_v35 = vrot.slane %v2134_v39, 2 }
 0x397   : > { %v2152_v13 = vsel %vm2151_vm7, %v2150_v11, %v2149_v6  ;;  %3015 = vmatpush3.bf16.msra.mxu1 %v3014_v61  ;;  %v2382_v6 = vld [vmem:[%s3790_s8 + $0x30] sm:$0xff] }
 0x398   : > { %v2155_v16 = vsel %vm2154_vm8, %v2153_v12, %v2152_v13  ;;  %3016 = vmatprep.subr.bf16.mxu1 %v3215_v0  ;;  %v3020_v8 = vpack.c.bf16 %v2383_v7, %v2382_v6  ;;  %v2628_v13 = vld [vmem:[%s3791_s9] ss:$0 sm:$0xff] }
 0x39a   : > { %v1970_v23 = vpop.f32.mrb[22].mxu1 }
 0x39b   : > { %v2133_v24 = vmul.f32 %v3137_v21, %v1970_v23  ;;  %v2868_v26 = vpop.f32.mrb[23].mxu1  ;;  %3018 = vmatpush3.bf16.msra.mxu1 %v3017_v4 }
 0x39c   : > { %3019 = vmatprep.subr.bf16.mxu1 %v3215_v0 }
 0x39d   : > { %v2156_v34 = vrot.slane %v2133_v24, 3 }
 0x39f   : > { %v2158_v28 = vsel %vm2157_vm9, %v2156_v34, %v2155_v16  ;;  %3021 = vmatpush3.bf16.msra.mxu1 %v3020_v8 }
 0x3a0   : > { %v2161_v29 = vsel %vm2160_vm10, %v2159_v35, %v2158_v28  ;;  %2923 = vmatprep.subr.mxu1 %v3217_v1 }
 0x3a2   : > { %v2116_v36 = vpop.f32.mrb[24].mxu1 }
 0x3a3   : > { %v2135_v37 = vmul.f32 %v3139_v32, %v2116_v36  ;;  %v2882_v38 = vpop.f32.mrb[25].mxu1  ;;  %2924 = vmatpush3.msra.mxu1 %v2384_v9 }
 0x3a5   : > { %v2162_v5 = vrot.slane %v2135_v37, 1 }
 0x3a7   : > { %v2164_v14 = vsel %vm2163_vm11, %v2162_v5, %v2161_v29 }
 0x3a8   : > { %2165 = vrot.lane.b32.xlu0 %v2164_v14, %s3219_s24  ;;  %s3223_s24 = smov 104  }
 0x3ab   : > { %v2329_v17 = vpop.f32.mrb[26].mxu1 }
 0x3ac   : > { %2357 = vrot.lane.b32.xlu0 %v3453_v30, %s3220_s26  ;;  %v2330_v40 = vadd.f32 %v2625_v15, %v2329_v17  ;;  %v2906_v41 = vpop.f32.mrb[27].mxu1 }
 0x3ae   : > { %2341 = vrot.lane.b32.xlu1 %v2330_v40, %s3221_s30 }
 0x3b0   : > { %2366 = vrot.lane.b32.xlu0 %v2164_v14, %s3220_s26 }
 0x41a   : > { %v2166_v43 = vpop.permute.xlu0 %2165 }
 0x41b   : > { %v2169_v30 = vsel %vm2168_vm12, %v414_v42, %v2166_v43 }
 0x41c   : > { %2894 = vmatmul.mubr.msk.f32.vlgmr.msra.gmra.mrb[24].mxu0 %vm2180_vm13, %v2169_v30 }
 0x41e   : > { %v2358_v19 = vpop.permute.xlu0 %2357 }
 0x420   : > { %v2342_v52 = vpop.permute.xlu1 %2341 }
 0x422   : > { %v2367_v1 = vpop.permute.xlu0 %2366 }
 0x4ef   : > { %v2250_v44 = vpop.f32.mrb[24].mxu0 }
 0x4f0   : > { %v2251_v46 = vadd.f32 %v2623_v45, %v2250_v44  ;;  %v2895_v47 = vpop.f32.mrb[25].mxu0 }
 0x4f2   : > { %v2333_v49 = vadd.f32 %v2330_v40, %v2251_v46 }
 0x4f4   : > { %v2627_v50 = vmul.f32 -1.442695, %v2333_v49 }
 0x4f6   : > { %3140 = vpow2.f32 %v2627_v50 }
 0x500   : > { %v3141_v48 = vpop.eup %3140 }
 0x501   : > { %v2337_v51 = vadd.f32 1.0, %v3141_v48 }
 0x503   : > { %3142 = vrcp.f32 %v2337_v51 }
 0x50d   : > { %v3143_v53 = vpop.eup %3142 }
 0x50e   : > { %v2344_v54 = vmul.f32 %v3143_v53, %v2342_v52  ;;  %v2351_v10 = vsub.f32 1.0, %v3143_v53  ;;  %v2360_v20 = vmul.f32 %v3143_v53, %v2358_v19 }
 0x510   : > { %2346 = vrot.lane.b32.xlu1 %v2344_v54, %s3221_s30 }
 0x582   : > { %v2347_v55 = vpop.permute.xlu1 %2346 }
 0x583   : > { %v2349_v56 = vadd.f32 %v2347_v55, %v2251_v46 }
 0x585   : > { %3144 = vtanh.f32 %v2349_v56 }
 0x58f   : > { %v3145_v62 = vpop.eup %3144 }
 0x590   : > { %2353 = vrot.lane.b32.xlu1 %v3145_v62, %s3222_s23 }
 0x602   : > { %v2354_v0 = vpop.permute.xlu1 %2353 }
 0x603   : > { %v2356_v25 = vmul.f32 %v2354_v0, %v2351_v10 }
 0x605   : > { %v2361_v27 = vadd.f32 %v2360_v20, %v2356_v25 }
 0x607   : > { %2466 = vrot.lane.b32.xlu0 %v2361_v27, %s3223_s24  ;;  %2363 = vrot.lane.b32.xlu1 %v2361_v27, %s3222_s23 }
 0x60b   : > { %2370 = vrot.lane.b32.xlu1 %v414_v42, %s3221_s30  ;;  %s413_s30 = scalar_lea.vmem %s3792_s10, %s3394_s25 }
 0x679   : > { %v2364_v31 = vpop.permute.xlu1 %2363  ;;  %v2467_v39 = vpop.permute.xlu0 %2466 }
 0x67a   : > { %v2373_v22 = vsel %vm442_vm1, %v2364_v31, %v2367_v1 }
 0x67d   : > { %v2371_v11 = vpop.permute.xlu1 %2370 }
 0x67e   : > { %v2375_v12 = vsel %vm2374_vm14, %v2373_v22, %v2371_v11 }
 0x67f   : > { %2926 = vmatmul.mubr.msk.f32.vlgmr.msra.gmra.mrb[28].mxu1 %vm2392_vm15, %v2375_v12 }
 0x752   : > { %v2462_v16 = vpop.f32.mrb[28].mxu1 }
 0x753   : > { %v2463_v18 = vadd.f32 %v2628_v13, %v2462_v16  ;;  %v2927_v21 = vpop.f32.mrb[29].mxu1 }
 0x755   : > { %v2469_v23 = vsel %vm2168_vm12, %v2463_v18, %v2467_v39 }
 0x756   : > { %v2470_v24 = vsel %vm2180_vm13, %v2469_v23, 0.0 }
 0x757   : > { %2471 = vst [vmem:[%s413_s30] sm:$0xff] %v2470_v24 }
 0x758 PF: > { %p20_p7 = scmp.ge.s32.totalorder %s3301_s18, 4   ;;  %s3798_s13 = smov %s3202_s14 }
 0x759   : > { %s3799_s14 = smov %s3206_s15  ;;  %s3800_s15 = smov %s3311_s21 }
 0x75a   : > { %s3801_s16 = smov %s3301_s18  ;;  %22 = sbr.rel (!%p20_p7) target bundleno = 3 (0x3), region = 106 }
 0x761   :  { %2491 = vsyncpa [#allocation3], 1 }
 0x762   :  { %2493 = vsyncpa [#allocation3 + $0x1], 1 }

</bundles_post_ra>
